<compile_context>
chip_gen: v7x
topology: tpu7x:2x2x1
jax: 0.10.0
libtpu: 0.0.40
codegen_flags: <defaults>
</compile_context>

<pallas_src>
import numpy as np
import jax
import jax.numpy as jnp
from jax import lax
from jax.experimental import pallas as pl
from jax.experimental.pallas import tpu as pltpu


# ----------------------------------------------------------------------------
# VMEM-aware sizing helpers
# ----------------------------------------------------------------------------
def _vmem_cap_bytes():
    """Physical per-core VMEM; conservative (v7x) fallback if the query fails."""
    try:
        return int(pltpu.get_tpu_info().vmem_capacity_bytes)
    except Exception:
        return 64 << 20


def _vmem_budget_bytes():
    # Budget for pipelined blocks; leaves room for compiler scratch,
    # semaphores and accounting slack.
    return int(_vmem_cap_bytes() * 0.55)


def _vmem_limit_bytes(working_set_bytes):
    cap = _vmem_cap_bytes()
    want = int(working_set_bytes) + (8 << 20)        # compiler-scratch headroom
    return int(min(max(want, 32 << 20), int(cap * 0.9)))


def _largest_divisor(n, cap, multiple=1):
    """Largest divisor of n that is <= cap and a multiple of `multiple`.

    TODO(synk): add a pad/remainder path instead of falling back to the full
    extent when no suitable divisor exists (prime-ish production shapes).
    """
    cap = int(cap)
    if n <= cap:
        return n
    for c in range(min(cap, n), 0, -1):
        if n % c == 0 and c % multiple == 0:
            return c
    return n


def _single_buffer_kwargs():
    """BlockSpec kwargs requesting a single VMEM buffer for constant-index
    weight blocks (their index_map does not change along the inner grid axis,
    so the default double buffer is pure VMEM waste)."""
    buffered = getattr(pl, "Buffered", None)
    return dict(pipeline_mode=buffered(1)) if buffered is not None else {}


# ----------------------------------------------------------------------------
# Pallas kernels
# ----------------------------------------------------------------------------
def _in_proj_kernel(x_ref, w_ref, b_ref, out_ref):
    """Direction-fused input projection for one chunk of the T*B rows.

    x_ref  : (Dd_in, RB, Din)  bf16  row chunk of the flattened inputs
    w_ref  : (Dd_in, Din, 8H)  bf16  [..., :4H]=forward dir, [..., 4H:]=backward
    b_ref  : (2, 1, 4H)        f32   b_ih + b_hh folded, per direction
    out_ref: (2, RB, 4H)       bf16  gates_x for both directions
    """
    dd = x_ref.shape[0]
    acc = jnp.dot(x_ref[0], w_ref[0], preferred_element_type=jnp.float32)
    for di in range(1, dd):
        acc = acc + jnp.dot(x_ref[di], w_ref[di],
                            preferred_element_type=jnp.float32)
    G = out_ref.shape[-1]                       # 4H (lane aligned when H%32==0)
    out_ref[0] = (acc[:, :G] + b_ref[0]).astype(out_ref.dtype)
    out_ref[1] = (acc[:, G:] + b_ref[1]).astype(out_ref.dtype)


def _lstm_rec_kernel(gx_ref, whh_ref, out_ref, h_scr, c_scr):
    """LSTM recurrence over one time chunk of one direction. grid=(2, NC).

    gx_ref : (1, TC, B, 4H) bf16  precomputed x@W_ih + b (chunks arrive in
                                  reversed order for the backward direction)
    whh_ref: (1, H, 4H)     bf16
    out_ref: (1, TC, B, H)  bf16
    h_scr/c_scr: (B, H) f32 VMEM scratch carried across time chunks
    """
    d = pl.program_id(0)                 # 0 = forward, 1 = backward
    chunk = pl.program_id(1)
    tc = gx_ref.shape[1]
    B = h_scr.shape[0]
    H = h_scr.shape[-1]
    G = gx_ref.shape[-1]

    @pl.when(chunk == 0)
    def _():
        h_scr[...] = jnp.zeros_like(h_scr)
        c_scr[...] = jnp.zeros_like(c_scr)

    whh = whh_ref[0]                     # (H, 4H) bf16, hoisted out of the loop

    # Partial unroll once the per-step (B, 4H) f32 gate temporary gets large
    # (full unroll would inflate live ranges and spill vregs).
    gate_vregs = (B * G) // 1024
    unroll = tc if gate_vregs <= 8 else min(tc, 4)

    def run(reverse):
        def step(j, carry):
            h, c = carry
            jj = tc - 1 - j if reverse else j        # static direction branch
            gates = gx_ref[0, jj].astype(jnp.float32) + jnp.dot(
                h.astype(whh.dtype), whh, preferred_element_type=jnp.float32)
            # NOTE: H should be a multiple of 128 for lane-aligned gate slices.
            i_g = jax.nn.sigmoid(gates[:, 0 * H:1 * H])
            f_g = jax.nn.sigmoid(gates[:, 1 * H:2 * H])
            g_g = jnp.tanh(gates[:, 2 * H:3 * H])
            o_g = jax.nn.sigmoid(gates[:, 3 * H:4 * H])
            c_new = f_g * c + i_g * g_g
            h_new = o_g * jnp.tanh(c_new)
            out_ref[0, jj] = h_new.astype(out_ref.dtype)
            return h_new, c_new

        h_fin, c_fin = lax.fori_loop(0, tc, step, (h_scr[...], c_scr[...]),
                                     unroll=unroll)
        h_scr[...] = h_fin
        c_scr[...] = c_fin

    # TODO(synk): for small B (latency-bound) split h@W_hh into per-gate
    #             column blocks to overlap EUP nonlinearities with the MXU.
    @pl.when(d == 0)
    def _():
        run(False)

    @pl.when(d == 1)
    def _():
        run(True)


def _pool_fc_kernel(h_ref, w_ref, fcw_ref, fcb_ref, o_ref, acc_f, acc_b):
    """Masked mean pool (streamed over time) + fc, for one batch tile.

    h_ref  : (2, TT, BB, H) bf16   w_ref  : (TT, BB, 1) f32 = mask / num_tokens
    fcw_ref: (2, H, Ho)     f32    fcb_ref: (1, Ho)      f32
    o_ref  : (BB, Ho)       f32    acc_f/acc_b: (BB, H) f32 VMEM accumulators
    """
    t = pl.program_id(1)

    @pl.when(t == 0)
    def _():
        acc_f[...] = jnp.zeros_like(acc_f)
        acc_b[...] = jnp.zeros_like(acc_b)

    wts = w_ref[...]                                            # (TT, BB, 1)
    acc_f[...] += jnp.sum(h_ref[0].astype(jnp.float32) * wts, axis=0)
    acc_b[...] += jnp.sum(h_ref[1].astype(jnp.float32) * wts, axis=0)

    @pl.when(t == pl.num_programs(1) - 1)
    def _():
        out = (jnp.dot(acc_f[...], fcw_ref[0], preferred_element_type=jnp.float32)
               + jnp.dot(acc_b[...], fcw_ref[1], preferred_element_type=jnp.float32)
               + fcb_ref[...])
        o_ref[...] = out.astype(o_ref.dtype)


# ----------------------------------------------------------------------------
# Wrappers
# ----------------------------------------------------------------------------
def input_projection(x_dirs, w_ih, b):
    """x_dirs: (Dd_in, T, B, Din) bf16 -> gates_x: (2, T, B, 4H) bf16."""
    dd, T, B, Din = x_dirs.shape
    G2 = w_ih.shape[-1]                          # 8H (both output dirs fused)
    G = G2 // 2                                  # 4H
    R = T * B
    x_flat = x_dirs.reshape(dd, R, Din)          # contiguous, free reshape

    budget = _vmem_budget_bytes()
    w_bytes = dd * Din * G2 * 2 + 2 * G * 4
    per_row = 2 * (dd * Din * 2 + G2 * 2)        # x + out blocks, double buffered
    rb_cap = max(8, min(1024, (budget - w_bytes) // max(per_row, 1)))
    RB = _largest_divisor(R, rb_cap, multiple=8)
    NR = R // RB
    vmem_limit = _vmem_limit_bytes(2 * w_bytes + RB * per_row)

    def build(weight_kwargs):
        return pl.pallas_call(
            _in_proj_kernel,
            out_shape=jax.ShapeDtypeStruct((2, R, G), jnp.bfloat16),
            grid=(NR,),
            in_specs=[
                pl.BlockSpec((dd, RB, Din), lambda r: (0, r, 0)),
                pl.BlockSpec((dd, Din, G2), lambda r: (0, 0, 0), **weight_kwargs),
                pl.BlockSpec((2, 1, G), lambda r: (0, 0, 0)),
            ],
            out_specs=pl.BlockSpec((2, RB, G), lambda r: (0, r, 0)),
            compiler_params=pltpu.CompilerParams(
                dimension_semantics=("parallel",),
                vmem_limit_bytes=vmem_limit),
        )

    try:
        gx_flat = build(_single_buffer_kwargs())(x_flat, w_ih, b)
    except Exception:   # single-buffered weight blocks unsupported -> default
        gx_flat = build({})(x_flat, w_ih, b)
    return gx_flat.reshape(2, T, B, G)


def lstm_recurrence(gx, w_hh):
    """gx: (2, T, B, 4H) bf16, w_hh: (2, H, 4H) bf16 -> (2, T, B, H) bf16."""
    _, T, B, G = gx.shape
    H = w_hh.shape[1]

    budget = _vmem_budget_bytes()
    per_step = 2 * (B * G * 2 + B * H * 2)       # gx + out blocks, double buffered
    fixed = 2 * H * G * 2 + 2 * B * H * 4        # whh (2 bufs worst case) + h/c
    tc_cap = max(1, min(16, (budget - fixed) // max(per_step, 1)))
    TC = _largest_divisor(T, tc_cap)
    NC = T // TC
    vmem_limit = _vmem_limit_bytes(fixed + TC * per_step)

    def rev_map(d, c):
        # forward: chunk c ; backward: chunk NC-1-c (reverse-indexed BlockSpec,
        # so the backward pass needs no [::-1] HBM copies).
        return (d, c + d * (NC - 1 - 2 * c), 0, 0)

    def build(weight_kwargs):
        return pl.pallas_call(
            _lstm_rec_kernel,
            out_shape=jax.ShapeDtypeStruct((2, T, B, H), jnp.bfloat16),
            grid=(2, NC),
            in_specs=[
                pl.BlockSpec((1, TC, B, G), rev_map),
                pl.BlockSpec((1, H, G), lambda d, c: (d, 0, 0), **weight_kwargs),
            ],
            out_specs=pl.BlockSpec((1, TC, B, H), rev_map),
            scratch_shapes=[pltpu.VMEM((B, H), jnp.float32),
                            pltpu.VMEM((B, H), jnp.float32)],
            compiler_params=pltpu.CompilerParams(
                # directions independent -> parallel (2 TCs on v7x); the time
                # chunk axis carries h/c state -> arbitrary (serial).
                dimension_semantics=("parallel", "arbitrary"),
                vmem_limit_bytes=vmem_limit),
        )

    try:
        return build(_single_buffer_kwargs())(gx, w_hh)
    except Exception:
        return build({})(gx, w_hh)


def pool_fc(h_dirs, w_tm, fc_w, fc_b):
    """h_dirs: (2, T, B, H) bf16, w_tm: (T, B, 1) f32 (mask / num_tokens),
    fc_w: (2, H, Ho) f32, fc_b: (1, Ho) f32 -> (B, Ho) f32."""
    _, T, B, H = h_dirs.shape
    Ho = fc_w.shape[-1]

    budget = _vmem_budget_bytes()
    BB = _largest_divisor(B, 256, multiple=8)
    fixed = 2 * (2 * H * Ho * 4 + Ho * 4) + 2 * BB * H * 4 + BB * Ho * 4
    per_t = 2 * (2 * BB * H * 2 + BB * 4)        # h + weight blocks, double buffered
    tt_cap = max(1, (budget - fixed) // max(per_t, 1))
    TT = _largest_divisor(T, tt_cap)
    NB, NT = B // BB, T // TT
    vmem_limit = _vmem_limit_bytes(fixed + TT * per_t)

    return pl.pallas_call(
        _pool_fc_kernel,
        out_shape=jax.ShapeDtypeStruct((B, Ho), jnp.float32),
        grid=(NB, NT),
        in_specs=[
            pl.BlockSpec((2, TT, BB, H), lambda b, t: (0, t, b, 0)),
            pl.BlockSpec((TT, BB, 1), lambda b, t: (t, b, 0)),
            pl.BlockSpec((2, H, Ho), lambda b, t: (0, 0, 0)),
            pl.BlockSpec((1, Ho), lambda b, t: (0, 0)),
        ],
        out_specs=pl.BlockSpec((BB, Ho), lambda b, t: (b, 0)),
        scratch_shapes=[pltpu.VMEM((BB, H), jnp.float32),
                        pltpu.VMEM((BB, H), jnp.float32)],
        compiler_params=pltpu.CompilerParams(
            dimension_semantics=("parallel", "arbitrary"),
            vmem_limit_bytes=vmem_limit),
    )(h_dirs, w_tm, fc_w, fc_b)


def bilstm_forward(params, token_ids, attention_mask):
    """Equivalent of BiLSTM.forward(x, attention_mask) in eval mode."""
    # Embedding lookup (gather) -- plain-JAX glue; padding_idx row is zero.
    x = params["embedding"][token_ids]                   # (B, T, E) f32
    # one transpose to time-major; all kernels stay time-major afterwards.
    # Large activations stored bf16 (accumulation stays f32 in the kernels).
    x = jnp.transpose(x, (1, 0, 2))[None].astype(jnp.bfloat16)   # (1, T, B, E)
    for layer in range(params["num_layers"]):
        lw = params["lstm"][layer]
        gx = input_projection(x, lw["w_ih"], lw["b"])    # (2, T, B, 4H) bf16
        x = lstm_recurrence(gx, lw["w_hh"])              # (2, T, B, H)  bf16
        # TODO(synk): nn.LSTM inter-layer dropout (p=0.1) only applies in
        # training mode; eval-mode semantics are reproduced here (no dropout).
    m = attention_mask.astype(jnp.float32)               # (B, T)
    # Deliberate deviation: clamp the token count so fully-padded rows return
    # the fc bias instead of NaN (the nn module would divide by zero).
    inv_n = 1.0 / jnp.maximum(m.sum(axis=1, keepdims=True), 1.0)
    # fold 1/num_tokens into the pooling weights (saves a VPU mul per dir).
    w_tm = jnp.transpose(m * inv_n)[:, :, None]          # (T, B, 1)
    return pool_fc(x, w_tm, params["fc_w"], params["fc_b"])


# ----------------------------------------------------------------------------
# Deterministic parameter initialization (synthetic; shapes map 1:1 onto the
# nn module's parameters, stored pre-split per direction / per input-half).
# Weights W_ih / W_hh are stored in bf16 (MXU-native), biases / fc in f32.
# ----------------------------------------------------------------------------
def init_params(key, vocab_size, embedding_dim, hidden_dim, num_layers=2):
    scale = 1.0 / np.sqrt(hidden_dim)
    G = 4 * hidden_dim

    def u(k, shape):
        return jax.random.uniform(k, shape, jnp.float32, -scale, scale)

    keys = jax.random.split(key, 3 + num_layers)
    emb = 0.1 * jax.random.normal(keys[0], (vocab_size, embedding_dim),
                                  jnp.float32)
    emb = emb.at[0].set(0.0)                               # padding_idx = 0

    lstm = []
    for layer in range(num_layers):
        d_dirs = 1 if layer == 0 else 2
        d_per = embedding_dim if layer == 0 else hidden_dim
        lk = jax.random.split(keys[3 + layer], 4)
        lstm.append(dict(
            # (in_half, Din_per, 8H): cols [:4H]=forward dir, [4H:]=backward
            w_ih=u(lk[0], (d_dirs, d_per, 2 * G)).astype(jnp.bfloat16),
            # (out_dir, H, 4H)  == PyTorch weight_hh transposed
            w_hh=u(lk[1], (2, hidden_dim, G)).astype(jnp.bfloat16),
            # bias_ih + bias_hh folded, per direction (f32)
            b=(u(lk[2], (2, 1, G)) + u(lk[3], (2, 1, G))),
        ))

    fc_w = u(keys[1], (2, hidden_dim, hidden_dim))         # split over dirs
    fc_b = u(keys[2], (1, hidden_dim))
    return dict(embedding=emb, lstm=lstm, fc_w=fc_w, fc_b=fc_b,
                num_layers=num_layers, hidden_dim=hidden_dim)


# ----------------------------------------------------------------------------
# Pure-JAX reference (uses the same bf16-rounded weights, f32 activations)
# ----------------------------------------------------------------------------
def _ref_cell(x, h, c, w_ih, w_hh, b):
    gates = x @ w_ih + h @ w_hh + b
    H = h.shape[-1]
    i = jax.nn.sigmoid(gates[:, :H])
    f = jax.nn.sigmoid(gates[:, H:2 * H])
    g = jnp.tanh(gates[:, 2 * H:3 * H])
    o = jax.nn.sigmoid(gates[:, 3 * H:])
    c = f * c + i * g
    return o * jnp.tanh(c), c


def ref_forward(params, ids, mask):
    x = params["embedding"][ids]
    B, T, _ = x.shape
    H = params["hidden_dim"]
    G = 4 * H
    for layer in range(params["num_layers"]):
        lw = params["lstm"][layer]
        w_ih_all = lw["w_ih"].astype(jnp.float32)           # (dd, Dper, 8H)
        dd = w_ih_all.shape[0]
        w_hh = lw["w_hh"].astype(jnp.float32)
        b = lw["b"]
        w_ih = [jnp.concatenate([w_ih_all[di, :, d * G:(d + 1) * G]
                                 for di in range(dd)], axis=0)
                for d in range(2)]
        h = jnp.zeros((B, H)); c = jnp.zeros((B, H)); outs_f = []
        for t in range(T):
            h, c = _ref_cell(x[:, t], h, c, w_ih[0], w_hh[0], b[0, 0])
            outs_f.append(h)
        h = jnp.zeros((B, H)); c = jnp.zeros((B, H)); outs_b = [None] * T
        for t in range(T - 1, -1, -1):
            h, c = _ref_cell(x[:, t], h, c, w_ih[1], w_hh[1], b[1, 0])
            outs_b[t] = h
        x = jnp.concatenate([jnp.stack(outs_f, 1), jnp.stack(outs_b, 1)], -1)
    m = mask.astype(x.dtype)
    pooled = (x * m[:, :, None]).sum(1) / jnp.maximum(m.sum(1, keepdims=True), 1.0)
    fc_w = jnp.concatenate([params["fc_w"][0], params["fc_w"][1]], axis=0)
    return pooled @ fc_w + params["fc_b"][0]


# ----------------------------------------------------------------------------
if __name__ == "__main__":
    VOCAB, EMB, HID, LAYERS = 50, 16, 32, 2
    B, T = 2, 8

    key = jax.random.PRNGKey(0)
    k_p, k_ids = jax.random.split(key)
    params = init_params(k_p, VOCAB, EMB, HID, LAYERS)

    # token ids: valid tokens in [1, VOCAB), padding (id 0) at the tail.
    ids = jax.random.randint(k_ids, (B, T), 1, VOCAB, dtype=jnp.int32)
    valid_lens = jnp.array([T, T - 3], dtype=jnp.int32)
    pos = jnp.arange(T)[None, :]
    attention_mask = (pos < valid_lens[:, None]).astype(jnp.float32)  # (B, T)
    ids = jnp.where(attention_mask > 0, ids, 0)

    out = jax.block_until_ready(bilstm_forward(params, ids, attention_mask))

    # bf16 activation storage (f32 accumulate) -> small drift vs the pure-f32
    # activation reference; tolerance loosened accordingly.
    ref = ref_forward(params, ids, attention_mask)
    np.testing.assert_allclose(np.asarray(out), np.asarray(ref),
                               rtol=3e-2, atol=3e-2)

    assert out.shape == (B, HID) and out.dtype == jnp.float32
    print("KERNEL_OK")
</pallas_src>

<mosaic_0001>
module attributes {stable_mosaic.version = 11 : i64} {
  func.func @_in_proj_kernel(%arg0: i32, %arg1: memref<1x16x16xbf16, #tpu.memory_space<vmem>>, %arg2: memref<1x16x256xbf16, #tpu.memory_space<vmem>>, %arg3: memref<2x1x128xf32, #tpu.memory_space<vmem>>, %arg4: memref<2x16x128xbf16, #tpu.memory_space<vmem>>) attributes {dimension_semantics = [#tpu.dimension_semantics<parallel>], iteration_bounds = array<i64: 1>, scalar_prefetch = 0 : i64, scratch_operands = 0 : i64, tpu.core_type = #tpu.core_type<tc>, window_params = [{transform_indices = @transform_0, window_bounds = array<i64: 1, 16, 16>}, {pipeline_mode = #tpu.pipeline_mode<synchronous>, transform_indices = @transform_1, window_bounds = array<i64: 1, 16, 256>}, {pipeline_mode = #tpu.pipeline_mode<synchronous>, transform_indices = @transform_2, window_bounds = array<i64: 2, 1, 128>}, {transform_indices = @transform_3, window_bounds = array<i64: 2, 16, 128>}]} {
    %c0 = arith.constant 0 : index
    %c0_0 = arith.constant 0 : index
    %c0_1 = arith.constant 0 : index
    %0 = vector.load %arg1[%c0, %c0_0, %c0_1] : memref<1x16x16xbf16, #tpu.memory_space<vmem>>, vector<1x16x16xbf16>
    %1 = vector.shape_cast %0 : vector<1x16x16xbf16> to vector<16x16xbf16>
    %c0_2 = arith.constant 0 : index
    %c0_3 = arith.constant 0 : index
    %c0_4 = arith.constant 0 : index
    %2 = vector.load %arg2[%c0_2, %c0_3, %c0_4] : memref<1x16x256xbf16, #tpu.memory_space<vmem>>, vector<1x16x256xbf16>
    %3 = vector.shape_cast %2 : vector<1x16x256xbf16> to vector<16x256xbf16>
    %cst = arith.constant dense<0.000000e+00> : vector<16x256xf32>
    %4 = tpu.matmul %1, %3, %cst {dimension_numbers = #tpu.dot_dimension_numbers<[1], [0], [0], [1], [0, 0, 1, 1], [], []>} : vector<16x16xbf16>, vector<16x256xbf16>, vector<16x256xf32> -> vector<16x256xf32>
    %5 = vector.extract_strided_slice %4 {offsets = [0, 0], sizes = [16, 128], strides = [1, 1]} : vector<16x256xf32> to vector<16x128xf32>
    %c0_5 = arith.constant 0 : index
    %c0_6 = arith.constant 0 : index
    %c0_7 = arith.constant 0 : index
    %6 = vector.load %arg3[%c0_5, %c0_6, %c0_7] : memref<2x1x128xf32, #tpu.memory_space<vmem>>, vector<1x1x128xf32>
    %7 = vector.shape_cast %6 : vector<1x1x128xf32> to vector<1x128xf32>
    %8 = vector.broadcast %7 : vector<1x128xf32> to vector<16x128xf32>
    %9 = arith.addf %5, %8 : vector<16x128xf32>
    %10 = arith.truncf %9 : vector<16x128xf32> to vector<16x128xbf16>
    %c0_8 = arith.constant 0 : index
    %c0_9 = arith.constant 0 : index
    %c0_10 = arith.constant 0 : index
    %11 = vector.load %arg4[%c0_8, %c0_9, %c0_10] : memref<2x16x128xbf16, #tpu.memory_space<vmem>>, vector<1x16x128xbf16>
    %12 = vector.shape_cast %11 : vector<1x16x128xbf16> to vector<16x128xbf16>
    %13 = vector.shape_cast %10 : vector<16x128xbf16> to vector<1x16x128xbf16>
    tpu.vector_store %arg4[%c0_8, %c0_9, %c0_10], %13 {strides = array<i32>} : memref<2x16x128xbf16, #tpu.memory_space<vmem>>, vector<1x16x128xbf16>,
    %14 = vector.extract_strided_slice %4 {offsets = [0, 128], sizes = [16, 128], strides = [1, 1]} : vector<16x256xf32> to vector<16x128xf32>
    %c1 = arith.constant 1 : index
    %c0_11 = arith.constant 0 : index
    %c0_12 = arith.constant 0 : index
    %15 = vector.load %arg3[%c1, %c0_11, %c0_12] : memref<2x1x128xf32, #tpu.memory_space<vmem>>, vector<1x1x128xf32>
    %16 = vector.shape_cast %15 : vector<1x1x128xf32> to vector<1x128xf32>
    %17 = vector.broadcast %16 : vector<1x128xf32> to vector<16x128xf32>
    %18 = arith.addf %14, %17 : vector<16x128xf32>
    %19 = arith.truncf %18 : vector<16x128xf32> to vector<16x128xbf16>
    %c1_13 = arith.constant 1 : index
    %c0_14 = arith.constant 0 : index
    %c0_15 = arith.constant 0 : index
    %20 = vector.load %arg4[%c1_13, %c0_14, %c0_15] : memref<2x16x128xbf16, #tpu.memory_space<vmem>>, vector<1x16x128xbf16>
    %21 = vector.shape_cast %20 : vector<1x16x128xbf16> to vector<16x128xbf16>
    %22 = vector.shape_cast %19 : vector<16x128xbf16> to vector<1x16x128xbf16>
    tpu.vector_store %arg4[%c1_13, %c0_14, %c0_15], %22 {strides = array<i32>} : memref<2x16x128xbf16, #tpu.memory_space<vmem>>, vector<1x16x128xbf16>,
    return
  }
  func.func @transform_0(%arg0: i32) -> (i32, i32, i32) {
    %c0_i32 = arith.constant 0 : i32
    %c0_i32_0 = arith.constant 0 : i32
    %c0_i32_1 = arith.constant 0 : i32
    return %c0_i32, %arg0, %c0_i32_0 : i32, i32, i32
  }
  func.func @transform_1(%arg0: i32) -> (i32, i32, i32) {
    %c0_i32 = arith.constant 0 : i32
    %c0_i32_0 = arith.constant 0 : i32
    %c0_i32_1 = arith.constant 0 : i32
    %c0_i32_2 = arith.constant 0 : i32
    return %c0_i32, %c0_i32_0, %c0_i32_1 : i32, i32, i32
  }
  func.func @transform_2(%arg0: i32) -> (i32, i32, i32) {
    %c0_i32 = arith.constant 0 : i32
    %c0_i32_0 = arith.constant 0 : i32
    %c0_i32_1 = arith.constant 0 : i32
    %c0_i32_2 = arith.constant 0 : i32
    return %c0_i32, %c0_i32_0, %c0_i32_1 : i32, i32, i32
  }
  func.func @transform_3(%arg0: i32) -> (i32, i32, i32) {
    %c0_i32 = arith.constant 0 : i32
    %c0_i32_0 = arith.constant 0 : i32
    %c0_i32_1 = arith.constant 0 : i32
    return %c0_i32, %arg0, %c0_i32_0 : i32, i32, i32
  }
}

module attributes {stable_mosaic.version = 11 : i64} {
  func.func @_in_proj_kernel(%arg0: i32, %arg1: memref<1x16x16xbf16, #tpu.memory_space<vmem>>, %arg2: memref<1x16x256xbf16, #tpu.memory_space<vmem>>, %arg3: memref<2x1x128xf32, #tpu.memory_space<vmem>>, %arg4: memref<2x16x128xbf16, #tpu.memory_space<vmem>>) attributes {dimension_semantics = [#tpu.dimension_semantics<parallel>], iteration_bounds = array<i64: 1>, scalar_prefetch = 0 : i64, scratch_operands = 0 : i64, tpu.core_type = #tpu.core_type<tc>, window_params = [{transform_indices = @transform_0, window_bounds = array<i64: 1, 16, 16>}, {pipeline_mode = #tpu.pipeline_mode<synchronous>, transform_indices = @transform_1, window_bounds = array<i64: 1, 16, 256>}, {pipeline_mode = #tpu.pipeline_mode<synchronous>, transform_indices = @transform_2, window_bounds = array<i64: 2, 1, 128>}, {transform_indices = @transform_3, window_bounds = array<i64: 2, 16, 128>}]} {
    %c0 = arith.constant 0 : index
    %c0_0 = arith.constant 0 : index
    %c0_1 = arith.constant 0 : index
    %0 = vector.load %arg1[%c0, %c0_0, %c0_1] : memref<1x16x16xbf16, #tpu.memory_space<vmem>>, vector<1x16x16xbf16>
    %1 = vector.shape_cast %0 : vector<1x16x16xbf16> to vector<16x16xbf16>
    %c0_2 = arith.constant 0 : index
    %c0_3 = arith.constant 0 : index
    %c0_4 = arith.constant 0 : index
    %2 = vector.load %arg2[%c0_2, %c0_3, %c0_4] : memref<1x16x256xbf16, #tpu.memory_space<vmem>>, vector<1x16x256xbf16>
    %3 = vector.shape_cast %2 : vector<1x16x256xbf16> to vector<16x256xbf16>
    %cst = arith.constant dense<0.000000e+00> : vector<16x256xf32>
    %4 = tpu.matmul %1, %3, %cst {dimension_numbers = #tpu.dot_dimension_numbers<[1], [0], [0], [1], [0, 0, 1, 1], [], []>} : vector<16x16xbf16>, vector<16x256xbf16>, vector<16x256xf32> -> vector<16x256xf32>
    %5 = vector.extract_strided_slice %4 {offsets = [0, 0], sizes = [16, 128], strides = [1, 1]} : vector<16x256xf32> to vector<16x128xf32>
    %c0_5 = arith.constant 0 : index
    %c0_6 = arith.constant 0 : index
    %c0_7 = arith.constant 0 : index
    %6 = vector.load %arg3[%c0_5, %c0_6, %c0_7] : memref<2x1x128xf32, #tpu.memory_space<vmem>>, vector<1x1x128xf32>
    %7 = vector.shape_cast %6 : vector<1x1x128xf32> to vector<1x128xf32>
    %8 = vector.broadcast %7 : vector<1x128xf32> to vector<16x128xf32>
    %9 = arith.addf %5, %8 : vector<16x128xf32>
    %10 = arith.truncf %9 : vector<16x128xf32> to vector<16x128xbf16>
    %c0_8 = arith.constant 0 : index
    %c0_9 = arith.constant 0 : index
    %c0_10 = arith.constant 0 : index
    %11 = vector.load %arg4[%c0_8, %c0_9, %c0_10] : memref<2x16x128xbf16, #tpu.memory_space<vmem>>, vector<1x16x128xbf16>
    %12 = vector.shape_cast %11 : vector<1x16x128xbf16> to vector<16x128xbf16>
    %13 = vector.shape_cast %10 : vector<16x128xbf16> to vector<1x16x128xbf16>
    tpu.vector_store %arg4[%c0_8, %c0_9, %c0_10], %13 {strides = array<i32>} : memref<2x16x128xbf16, #tpu.memory_space<vmem>>, vector<1x16x128xbf16>,
    %14 = vector.extract_strided_slice %4 {offsets = [0, 128], sizes = [16, 128], strides = [1, 1]} : vector<16x256xf32> to vector<16x128xf32>
    %c1 = arith.constant 1 : index
    %c0_11 = arith.constant 0 : index
    %c0_12 = arith.constant 0 : index
    %15 = vector.load %arg3[%c1, %c0_11, %c0_12] : memref<2x1x128xf32, #tpu.memory_space<vmem>>, vector<1x1x128xf32>
    %16 = vector.shape_cast %15 : vector<1x1x128xf32> to vector<1x128xf32>
    %17 = vector.broadcast %16 : vector<1x128xf32> to vector<16x128xf32>
    %18 = arith.addf %14, %17 : vector<16x128xf32>
    %19 = arith.truncf %18 : vector<16x128xf32> to vector<16x128xbf16>
    %c1_13 = arith.constant 1 : index
    %c0_14 = arith.constant 0 : index
    %c0_15 = arith.constant 0 : index
    %20 = vector.load %arg4[%c1_13, %c0_14, %c0_15] : memref<2x16x128xbf16, #tpu.memory_space<vmem>>, vector<1x16x128xbf16>
    %21 = vector.shape_cast %20 : vector<1x16x128xbf16> to vector<16x128xbf16>
    %22 = vector.shape_cast %19 : vector<16x128xbf16> to vector<1x16x128xbf16>
    tpu.vector_store %arg4[%c1_13, %c0_14, %c0_15], %22 {strides = array<i32>} : memref<2x16x128xbf16, #tpu.memory_space<vmem>>, vector<1x16x128xbf16>,
    return
  }
  func.func @transform_0(%arg0: i32) -> (i32, i32, i32) {
    %c0_i32 = arith.constant 0 : i32
    %c0_i32_0 = arith.constant 0 : i32
    %c0_i32_1 = arith.constant 0 : i32
    return %c0_i32, %arg0, %c0_i32_0 : i32, i32, i32
  }
  func.func @transform_1(%arg0: i32) -> (i32, i32, i32) {
    %c0_i32 = arith.constant 0 : i32
    %c0_i32_0 = arith.constant 0 : i32
    %c0_i32_1 = arith.constant 0 : i32
    %c0_i32_2 = arith.constant 0 : i32
    return %c0_i32, %c0_i32_0, %c0_i32_1 : i32, i32, i32
  }
  func.func @transform_2(%arg0: i32) -> (i32, i32, i32) {
    %c0_i32 = arith.constant 0 : i32
    %c0_i32_0 = arith.constant 0 : i32
    %c0_i32_1 = arith.constant 0 : i32
    %c0_i32_2 = arith.constant 0 : i32
    return %c0_i32, %c0_i32_0, %c0_i32_1 : i32, i32, i32
  }
  func.func @transform_3(%arg0: i32) -> (i32, i32, i32) {
    %c0_i32 = arith.constant 0 : i32
    %c0_i32_0 = arith.constant 0 : i32
    %c0_i32_1 = arith.constant 0 : i32
    return %c0_i32, %arg0, %c0_i32_0 : i32, i32, i32
  }
}

</mosaic_0001>

<bundles_post_ra>
// kernel: tpu_custom_call.1
= control target key start
LH: loop header
LB: loop body
LE: loop exit
PB: predicated region body
PF: predicated region fallthrough
CT: control target
= control target key end

     0   :  { %8 = vsyncpa [#allocation3], 0  ;;  %s353_s0 = inlined_call_operand.hbm [shape: bf16[1,16,16], index: 0, kind: input, shape index: {}]   ;;  %s354_s1 = inlined_call_operand.hbm [shape: bf16[1,16,256], index: 1, kind: input, shape index: {}]   ;;  %s355_s2 = inlined_call_operand.vmem [shape: f32[2,1,128], index: 2, kind: input, shape index: {}]   ;;  %s356_s3 = inlined_call_operand.hbm [shape: bf16[2,16,128], index: 3, kind: output, shape index: {}]  }
   0x1   :  { %9 = vsyncpa [#allocation6], 0 }
   0x2   :  { %10 = vsyncpa [#allocation4], 0  ;;  %s277_s12 = smov [#allocation2]   ;;  %s205_s16 = scalar_lea.hbm %s353_s0, 128 }
   0x3   :  { %s16_s13 = sshll.u32 %s277_s12, 4  ;;  %p206_p0 = scmp.ne.s32.totalorder %s353_s0, %s205_s16  ;;  %s17_s13 = int_to_ptr.vmem [resolvable:$true] %s16_s13 }
   0x4   :  { %p209_p1 = scmp.lt.u32.totalorder %s205_s16, %s353_s0 }
   0x6   :  { %p211_p2 = pnand %p209_p1, %p206_p0 }
   0x8   :  { %214 = shalt.err (!%p211_p2)
}
   0x9   :  { %s215_s21 = scalar_lea.vmem %s17_s13, 128  ;;  %p220_p4 = scmp.lt.s32.totalorder %s17_s13, %s17_s13 }
   0xa   :  { %p216_p3 = scmp.ne.s32.totalorder %s17_s13, %s215_s21  ;;  %p221_p5 = scmp.lt.s32.totalorder %s215_s21, %s215_s21 }
   0xc   :  { %p222_p6 = por %p221_p5, %p220_p4 }
   0xe   :  { %p223_p7 = pnand %p222_p6, %p216_p3 }
  0x10   :  { %226 = shalt.err (!%p223_p7)
}
  0x11   :  { %s278_s22 = smov 64   ;;  %s279_s23 = smov 4  }
  0x12   :  { %22 = dma.hbm_to_vmem [thread:$0]  %s353_s0, 128, %s17_s13, [#allocation3], %s278_s22, %s278_s22, %s279_s23  }
  0x13   :  { %s280_s26 = smov [#allocation5]   ;;  %s227_s30 = scalar_lea.hbm %s354_s1, 256 }
  0x14   :  { %s28_s27 = sshll.u32 %s280_s26, 4  ;;  %p228_p8 = scmp.ne.s32.totalorder %s354_s1, %s227_s30  ;;  %s29_s27 = int_to_ptr.vmem [resolvable:$true] %s28_s27 }
  0x15   :  { %p231_p9 = scmp.lt.u32.totalorder %s227_s30, %s354_s1 }
  0x17   :  { %p233_p10 = pnand %p231_p9, %p228_p8 }
  0x19   :  { %236 = shalt.err (!%p233_p10)
}
  0x1a   :  { %s237_s8 = scalar_lea.vmem %s29_s27, 256  ;;  %p242_p12 = scmp.lt.s32.totalorder %s29_s27, %s29_s27 }
  0x1b   :  { %p238_p11 = scmp.ne.s32.totalorder %s29_s27, %s237_s8  ;;  %p243_p13 = scmp.lt.s32.totalorder %s237_s8, %s237_s8 }
  0x1d   :  { %p244_p0 = por %p243_p13, %p242_p12 }
  0x1f   :  { %p245_p1 = pnand %p244_p0, %p238_p11 }
  0x21   :  { %248 = shalt.err (!%p245_p1)
}
  0x22   :  { %s281_s0 = smov 128   ;;  %s282_s9 = smov 8  }
  0x23   :  { %34 = dma.hbm_to_vmem [thread:$0]  %s354_s1, 256, %s29_s27, [#allocation6], %s281_s0, %s281_s0, %s282_s9  }
  0x24   :  { %271 = dma.done.wait [#allocation3], 128  }
  0x25   :  { %272 = vsyncadd [#allocation3], 4294967168 }
  0x26   :  { %273 = dma.done.wait [#allocation6], 256  }
  0x27   :  { %274 = vsyncadd [#allocation6], 4294967040  ;;  %v283_v0 = vmov 0   ;;  %v201_v1 = vld [vmem:[#allocation5 + $0x4] ss:$8 sps:$4 sm:$0xff]   ;;  %v204_v3 = vld [vmem:[#allocation2] sm:$0xff]  }
  0x28   :  { %99 = vmatprep.mubr.bf16.mxu0 %v283_v0  ;;  %v203_v2 = vld [vmem:[#allocation5] ss:$8 sps:$4 sm:$0xff]   ;;  %67 = vmatprep.subr.bf16.mxu0 %v201_v1  ;;  %vm63_vm0 = vcmask 130048   ;;  %v172_v5 = vld [vmem:[%s355_s2] ss:$0 sm:$0xff]  ;;  %s284_s15 = smov [#allocation7]  }
  0x29   :  { %68 = vmatpush1.bf16.msra.mxu0 %v203_v2  ;;  %v176_v7 = vld [vmem:[%s355_s2 + $0x1] ss:$0 sm:$0xff]  ;;  %s155_s16 = sshll.u32 %s284_s15, 4  ;;  %s156_s16 = int_to_ptr.vmem [resolvable:$true] %s155_s16 }
  0x2a   :  { %s249_s17 = scalar_lea.vmem %s156_s16, 256  ;;  %p254_p3 = scmp.lt.s32.totalorder %s156_s16, %s156_s16 }
  0x2b   :  { %p250_p2 = scmp.ne.s32.totalorder %s156_s16, %s249_s17  ;;  %p255_p4 = scmp.lt.s32.totalorder %s249_s17, %s249_s17 }
  0x2c   :  { %171 = vmatmul.mubr.msk.bf16.vlgmr.msra.gmra.mrb[0].mxu0 %vm63_vm0, %v204_v3 }
  0x2d   :  { %p256_p5 = por %p255_p4, %p254_p3 }
  0x2f   :  { %p257_p6 = pnand %p256_p5, %p250_p2 }
  0xff   :  { %v101_v4 = vpop.f32.mrb[0].mxu0 }
 0x100   :  { %v103_v6 = vpop.f32.mrb[1].mxu0  ;;  %v117_v9 = vadd.f32 %v172_v5, %v101_v4 }
 0x101   :  { %v105_v8 = vpop.f32.mrb[2].mxu0  ;;  %v137_v12 = vadd.f32 %v176_v7, %v103_v6 }
 0x102   :  { %v118_v10 = vadd.f32 %v172_v5, %v105_v8  ;;  %v107_v11 = vpop.f32.mrb[3].mxu0 }
 0x103   :  { %v138_v13 = vadd.f32 %v176_v7, %v107_v11 }
 0x104   :  { %v186_v14 = vpack.c.bf16 %v118_v10, %v117_v9 }
 0x105   :  { %v191_v15 = vpack.c.bf16 %v138_v13, %v137_v12 }
 0x106   :  { %187 = vst [vmem:[#allocation7] sm:$0xff] %v186_v14  }
 0x107   :  { %192 = vst [vmem:[#allocation7 + $0x8] sm:$0xff] %v191_v15  }
 0x108   :  { %260 = shalt.err (!%p257_p6)
}
 0x109   :  { %s261_s19 = scalar_lea.hbm %s356_s3, 256 }
 0x10a   :  { %p262_p7 = scmp.ne.s32.totalorder %s356_s3, %s261_s19  ;;  %p265_p8 = scmp.lt.u32.totalorder %s261_s19, %s356_s3 }
 0x10c   :  { %p267_p9 = pnand %p265_p8, %p262_p7 }
 0x10e   :  { %270 = shalt.err (!%p267_p9)
}
 0x10f   :  { %161 = dma.vmem_to_hbm [thread:$0]  %s156_s16, 256, %s356_s3, [#allocation4], %s278_s22, %s278_s22, %s279_s23  }
 0x110   :  { %275 = dma.done.wait [#allocation4], 256  }
 0x111   :  { %276 = vsyncadd [#allocation4], 4294967040 }
 0x112   :  { %165 = vsyncpa [#allocation3], 1 }
 0x113   :  { %166 = vsyncpa [#allocation6], 1 }
 0x114   :  { %167 = vsyncpa [#allocation4], 1 }

// kernel: tpu_custom_call.1
= control target key start
LH: loop header
LB: loop body
LE: loop exit
PB: predicated region body
PF: predicated region fallthrough
CT: control target
= control target key end

     0   :  { %8 = vsyncpa [#allocation3], 0  ;;  %s353_s0 = inlined_call_operand.hbm [shape: bf16[1,16,16], index: 0, kind: input, shape index: {}]   ;;  %s354_s1 = inlined_call_operand.hbm [shape: bf16[1,16,256], index: 1, kind: input, shape index: {}]   ;;  %s355_s2 = inlined_call_operand.vmem [shape: f32[2,1,128], index: 2, kind: input, shape index: {}]   ;;  %s356_s3 = inlined_call_operand.hbm [shape: bf16[2,16,128], index: 3, kind: output, shape index: {}]  }
   0x1   :  { %9 = vsyncpa [#allocation6], 0 }
   0x2   :  { %10 = vsyncpa [#allocation4], 0  ;;  %s277_s12 = smov [#allocation2]   ;;  %s205_s16 = scalar_lea.hbm %s353_s0, 128 }
   0x3   :  { %s16_s13 = sshll.u32 %s277_s12, 4  ;;  %p206_p0 = scmp.ne.s32.totalorder %s353_s0, %s205_s16  ;;  %s17_s13 = int_to_ptr.vmem [resolvable:$true] %s16_s13 }
   0x4   :  { %p209_p1 = scmp.lt.u32.totalorder %s205_s16, %s353_s0 }
   0x6   :  { %p211_p2 = pnand %p209_p1, %p206_p0 }
   0x8   :  { %214 = shalt.err (!%p211_p2)
}
   0x9   :  { %s215_s21 = scalar_lea.vmem %s17_s13, 128  ;;  %p220_p4 = scmp.lt.s32.totalorder %s17_s13, %s17_s13 }
   0xa   :  { %p216_p3 = scmp.ne.s32.totalorder %s17_s13, %s215_s21  ;;  %p221_p5 = scmp.lt.s32.totalorder %s215_s21, %s215_s21 }
   0xc   :  { %p222_p6 = por %p221_p5, %p220_p4 }
   0xe   :  { %p223_p7 = pnand %p222_p6, %p216_p3 }
  0x10   :  { %226 = shalt.err (!%p223_p7)
}
  0x11   :  { %s278_s22 = smov 64   ;;  %s279_s23 = smov 4  }
  0x12   :  { %22 = dma.hbm_to_vmem [thread:$0]  %s353_s0, 128, %s17_s13, [#allocation3], %s278_s22, %s278_s22, %s279_s23  }
  0x13   :  { %s280_s26 = smov [#allocation5]   ;;  %s227_s30 = scalar_lea.hbm %s354_s1, 256 }
  0x14   :  { %s28_s27 = sshll.u32 %s280_s26, 4  ;;  %p228_p8 = scmp.ne.s32.totalorder %s354_s1, %s227_s30  ;;  %s29_s27 = int_to_ptr.vmem [resolvable:$true] %s28_s27 }
  0x15   :  { %p231_p9 = scmp.lt.u32.totalorder %s227_s30, %s354_s1 }
  0x17   :  { %p233_p10 = pnand %p231_p9, %p228_p8 }
  0x19   :  { %236 = shalt.err (!%p233_p10)
}
  0x1a   :  { %s237_s8 = scalar_lea.vmem %s29_s27, 256  ;;  %p242_p12 = scmp.lt.s32.totalorder %s29_s27, %s29_s27 }
  0x1b   :  { %p238_p11 = scmp.ne.s32.totalorder %s29_s27, %s237_s8  ;;  %p243_p13 = scmp.lt.s32.totalorder %s237_s8, %s237_s8 }
  0x1d   :  { %p244_p0 = por %p243_p13, %p242_p12 }
  0x1f   :  { %p245_p1 = pnand %p244_p0, %p238_p11 }
  0x21   :  { %248 = shalt.err (!%p245_p1)
}
  0x22   :  { %s281_s0 = smov 128   ;;  %s282_s9 = smov 8  }
  0x23   :  { %34 = dma.hbm_to_vmem [thread:$0]  %s354_s1, 256, %s29_s27, [#allocation6], %s281_s0, %s281_s0, %s282_s9  }
  0x24   :  { %271 = dma.done.wait [#allocation3], 128  }
  0x25   :  { %272 = vsyncadd [#allocation3], 4294967168 }
  0x26   :  { %273 = dma.done.wait [#allocation6], 256  }
  0x27   :  { %274 = vsyncadd [#allocation6], 4294967040  ;;  %v283_v0 = vmov 0   ;;  %v201_v1 = vld [vmem:[#allocation5 + $0x4] ss:$8 sps:$4 sm:$0xff]   ;;  %v204_v3 = vld [vmem:[#allocation2] sm:$0xff]  }
  0x28   :  { %99 = vmatprep.mubr.bf16.mxu0 %v283_v0  ;;  %v203_v2 = vld [vmem:[#allocation5] ss:$8 sps:$4 sm:$0xff]   ;;  %67 = vmatprep.subr.bf16.mxu0 %v201_v1  ;;  %vm63_vm0 = vcmask 130048   ;;  %v172_v5 = vld [vmem:[%s355_s2] ss:$0 sm:$0xff]  ;;  %s284_s15 = smov [#allocation7]  }
  0x29   :  { %68 = vmatpush1.bf16.msra.mxu0 %v203_v2  ;;  %v176_v7 = vld [vmem:[%s355_s2 + $0x1] ss:$0 sm:$0xff]  ;;  %s155_s16 = sshll.u32 %s284_s15, 4  ;;  %s156_s16 = int_to_ptr.vmem [resolvable:$true] %s155_s16 }
  0x2a   :  { %s249_s17 = scalar_lea.vmem %s156_s16, 256  ;;  %p254_p3 = scmp.lt.s32.totalorder %s156_s16, %s156_s16 }
  0x2b   :  { %p250_p2 = scmp.ne.s32.totalorder %s156_s16, %s249_s17  ;;  %p255_p4 = scmp.lt.s32.totalorder %s249_s17, %s249_s17 }
  0x2c   :  { %171 = vmatmul.mubr.msk.bf16.vlgmr.msra.gmra.mrb[0].mxu0 %vm63_vm0, %v204_v3 }
  0x2d   :  { %p256_p5 = por %p255_p4, %p254_p3 }
  0x2f   :  { %p257_p6 = pnand %p256_p5, %p250_p2 }
  0xff   :  { %v101_v4 = vpop.f32.mrb[0].mxu0 }
 0x100   :  { %v103_v6 = vpop.f32.mrb[1].mxu0  ;;  %v117_v9 = vadd.f32 %v172_v5, %v101_v4 }
 0x101   :  { %v105_v8 = vpop.f32.mrb[2].mxu0  ;;  %v137_v12 = vadd.f32 %v176_v7, %v103_v6 }
 0x102   :  { %v118_v10 = vadd.f32 %v172_v5, %v105_v8  ;;  %v107_v11 = vpop.f32.mrb[3].mxu0 }
 0x103   :  { %v138_v13 = vadd.f32 %v176_v7, %v107_v11 }
 0x104   :  { %v186_v14 = vpack.c.bf16 %v118_v10, %v117_v9 }
 0x105   :  { %v191_v15 = vpack.c.bf16 %v138_v13, %v137_v12 }
 0x106   :  { %187 = vst [vmem:[#allocation7] sm:$0xff] %v186_v14  }
 0x107   :  { %192 = vst [vmem:[#allocation7 + $0x8] sm:$0xff] %v191_v15  }
 0x108   :  { %260 = shalt.err (!%p257_p6)
}
 0x109   :  { %s261_s19 = scalar_lea.hbm %s356_s3, 256 }
 0x10a   :  { %p262_p7 = scmp.ne.s32.totalorder %s356_s3, %s261_s19  ;;  %p265_p8 = scmp.lt.u32.totalorder %s261_s19, %s356_s3 }
 0x10c   :  { %p267_p9 = pnand %p265_p8, %p262_p7 }
 0x10e   :  { %270 = shalt.err (!%p267_p9)
}
 0x10f   :  { %161 = dma.vmem_to_hbm [thread:$0]  %s156_s16, 256, %s356_s3, [#allocation4], %s278_s22, %s278_s22, %s279_s23  }
 0x110   :  { %275 = dma.done.wait [#allocation4], 256  }
 0x111   :  { %276 = vsyncadd [#allocation4], 4294967040 }
 0x112   :  { %165 = vsyncpa [#allocation3], 1 }
 0x113   :  { %166 = vsyncpa [#allocation6], 1 }
 0x114   :  { %167 = vsyncpa [#allocation4], 1 }

</bundles_post_ra>
